<compile_context>
chip_gen: v5e
topology: v5e:2x2
jax: 0.10.0
libtpu: 0.0.40
codegen_flags: <defaults>
</compile_context>

<pallas_src>
import functools

import jax
import jax.numpy as jnp
from jax.experimental import pallas as pl
from jax.experimental.pallas import tpu as pltpu


_LN_EPS = 1e-5
_VMEM_LIMIT = 32 * 1024 * 1024   # safe scoped-VMEM budget on v5e / v6e / v7x


def _edge_agg1_kernel(x_ref, h_ref, w1_ref, binv_ref, e1_ref):
    """Accumulate e1 = Binv * (H^T @ (x @ W1)) over node-row tiles."""
    i = pl.program_id(0)

    @pl.when(i == 0)
    def _():
        e1_ref[...] = jnp.zeros_like(e1_ref)

    y = jnp.dot(x_ref[...], w1_ref[...],
                preferred_element_type=jnp.float32)              # [tn, FH]
    e1_ref[...] += jax.lax.dot_general(
        h_ref[...], y.astype(jnp.bfloat16),
        dimension_numbers=(((0,), (0,)), ((), ())),              # contract node axis
        preferred_element_type=jnp.float32)                      # [E, FH]

    @pl.when(i == pl.num_programs(0) - 1)
    def _():
        e1_ref[...] *= binv_ref[...]


def _mid_kernel(h_ref, e1_ref, dinv_ref, b1_ref, mask_ref, w2_ref, binv_ref, e2_ref):
    """h1 = dropout(relu(Dinv*(H@e1)+b1)); accumulate e2 = Binv * (H^T @ (h1 @ W2))."""
    i = pl.program_id(0)

    @pl.when(i == 0)
    def _():
        e2_ref[...] = jnp.zeros_like(e2_ref)

    n1 = jnp.dot(h_ref[...], e1_ref[...],
                 preferred_element_type=jnp.float32)             # [tn, FH]
    h1 = jnp.maximum(n1 * dinv_ref[...] + b1_ref[...], 0.0)
    h1 = h1 * mask_ref[...]                                      # inverted dropout (pre-scaled)
    y2 = jnp.dot(h1.astype(jnp.bfloat16), w2_ref[...],
                 preferred_element_type=jnp.float32)             # [tn, FO]
    e2_ref[...] += jax.lax.dot_general(
        h_ref[...], y2.astype(jnp.bfloat16),
        dimension_numbers=(((0,), (0,)), ((), ())),
        preferred_element_type=jnp.float32)                      # [E, FO]

    @pl.when(i == pl.num_programs(0) - 1)
    def _():
        e2_ref[...] *= binv_ref[...]


def _node_out_kernel(h_ref, e2_ref, dinv_ref, b2_ref, gamma_ref, beta_ref, o_ref,
                     *, out_dim):
    """out = LayerNorm(Dinv*(H@e2)+b2), statistics masked to the real out_dim lanes."""
    n2 = jnp.dot(h_ref[...], e2_ref[...],
                 preferred_element_type=jnp.float32)             # [tn, FO]
    h2 = n2 * dinv_ref[...] + b2_ref[...]

    col = jax.lax.broadcasted_iota(jnp.int32, h2.shape, 1)
    cmask = (col < out_dim).astype(jnp.float32)
    inv_d = jnp.float32(1.0 / out_dim)
    mu = jnp.sum(h2 * cmask, axis=1, keepdims=True) * inv_d
    d = (h2 - mu) * cmask
    var = jnp.sum(d * d, axis=1, keepdims=True) * inv_d
    xn = d * jax.lax.rsqrt(var + _LN_EPS)
    o_ref[...] = xn * gamma_ref[...] + beta_ref[...]


def _round_up(v, m):
    return ((v + m - 1) // m) * m


def hgnn_forward(x, edge_index, edge_attr, params, keep_mask, *, tile_n=None):
    """x: [N,Fin] f32; edge_index: [2,nnz] int32 (node, hyperedge); edge_attr: [E] f32;
    keep_mask: [N,H1] f32 inverted-dropout mask (0 or 1/keep_prob)."""
    N, f_in = x.shape
    E = int(edge_attr.shape[0])
    h1_dim = params["w1"].shape[1]
    out_dim = params["w2"].shape[1]

    if tile_n is None:
        tile_n = 128 if N >= 128 else 8
    n_pad = _round_up(N, tile_n)
    e_pad = _round_up(E, 128)
    fi = _round_up(f_in, 128)
    fh = _round_up(h1_dim, 128)
    fo = _round_up(out_dim, 128)
    n_tiles = n_pad // tile_n

    f32, bf16 = jnp.float32, jnp.bfloat16

    # ---- O(nnz) glue: dense padded incidence + degree normalizations ------------
    # TODO(synk): for very sparse production graphs, replace dense H with CSR +
    # PrefetchScalarGridSpec gather/segment-sum kernels instead of dense MXU matmuls.
    rows, cols = edge_index[0], edge_index[1]
    H = jnp.zeros((n_pad, e_pad), f32).at[rows, cols].add(1.0)
    D = jnp.zeros((n_pad,), f32).at[rows].add(edge_attr[cols])
    B = jnp.zeros((e_pad,), f32).at[cols].add(1.0)
    dinv = jnp.where(D > 0, 1.0 / D, 0.0).reshape(n_pad, 1)
    binv = jnp.where(B > 0, 1.0 / B, 0.0).reshape(e_pad, 1)

    # ---- pad inputs/params to lane width -----------------------------------------
    x_p = jnp.zeros((n_pad, fi), f32).at[:N, :f_in].set(x)
    w1_p = jnp.zeros((fi, fh), f32).at[:f_in, :h1_dim].set(params["w1"])
    b1_p = jnp.zeros((1, fh), f32).at[:, :h1_dim].set(params["b1"].reshape(1, -1))
    w2_p = jnp.zeros((fh, fo), f32).at[:h1_dim, :out_dim].set(params["w2"])
    b2_p = jnp.zeros((1, fo), f32).at[:, :out_dim].set(params["b2"].reshape(1, -1))
    gamma_p = jnp.zeros((1, fo), f32).at[:, :out_dim].set(params["gamma"].reshape(1, -1))
    beta_p = jnp.zeros((1, fo), f32).at[:, :out_dim].set(params["beta"].reshape(1, -1))
    mask_p = jnp.zeros((n_pad, fh), f32).at[:N, :h1_dim].set(keep_mask)

    # bf16 MXU operands (accumulation stays f32 inside the kernels).
    h_bf = H.astype(bf16)
    x_bf = x_p.astype(bf16)
    w1_bf = w1_p.astype(bf16)
    w2_bf = w2_p.astype(bf16)

    grid = (n_tiles,)
    cp_reduce = pltpu.CompilerParams(dimension_semantics=("arbitrary",),
                                     vmem_limit_bytes=_VMEM_LIMIT)
    cp_parallel = pltpu.CompilerParams(dimension_semantics=("parallel",),
                                       vmem_limit_bytes=_VMEM_LIMIT)

    def tile_spec(width):
        return pl.BlockSpec((tile_n, width), lambda i: (i, 0))

    def full_spec(r, c):
        return pl.BlockSpec((r, c), lambda i: (0, 0))

    # K1: e1 = Binv * (H^T @ (x @ W1))
    e1 = pl.pallas_call(
        _edge_agg1_kernel,
        out_shape=jax.ShapeDtypeStruct((e_pad, fh), f32),
        grid=grid,
        in_specs=[tile_spec(fi), tile_spec(e_pad), full_spec(fi, fh),
                  full_spec(e_pad, 1)],
        out_specs=full_spec(e_pad, fh),
        compiler_params=cp_reduce,
        cost_estimate=pl.CostEstimate(
            flops=2 * n_pad * fi * fh + 2 * n_pad * e_pad * fh,
            transcendentals=0,
            bytes_accessed=2 * n_pad * (fi + e_pad) + 4 * e_pad * fh),
    )(x_bf, h_bf, w1_bf, binv)

    # K2: h1 = dropout(relu(Dinv*(H@e1)+b1));  e2 = Binv * (H^T @ (h1 @ W2))
    e2 = pl.pallas_call(
        _mid_kernel,
        out_shape=jax.ShapeDtypeStruct((e_pad, fo), f32),
        grid=grid,
        in_specs=[tile_spec(e_pad), full_spec(e_pad, fh), tile_spec(1),
                  full_spec(1, fh), tile_spec(fh), full_spec(fh, fo),
                  full_spec(e_pad, 1)],
        out_specs=full_spec(e_pad, fo),
        compiler_params=cp_reduce,
        cost_estimate=pl.CostEstimate(
            flops=2 * n_pad * e_pad * fh + 2 * n_pad * fh * fo + 2 * n_pad * e_pad * fo,
            transcendentals=0,
            bytes_accessed=2 * n_pad * (2 * e_pad + 2 * fh) + 4 * e_pad * (fh + fo)),
    )(h_bf, e1.astype(bf16), dinv, b1_p, mask_p, w2_bf, binv)

    # K3: out = LayerNorm(Dinv*(H@e2)+b2)
    out_p = pl.pallas_call(
        functools.partial(_node_out_kernel, out_dim=out_dim),
        out_shape=jax.ShapeDtypeStruct((n_pad, fo), f32),
        grid=grid,
        in_specs=[tile_spec(e_pad), full_spec(e_pad, fo), tile_spec(1),
                  full_spec(1, fo), full_spec(1, fo), full_spec(1, fo)],
        out_specs=tile_spec(fo),
        compiler_params=cp_parallel,
        cost_estimate=pl.CostEstimate(
            flops=2 * n_pad * e_pad * fo,
            transcendentals=n_pad,
            bytes_accessed=2 * n_pad * e_pad + 4 * (e_pad * fo + 2 * n_pad * fo)),
    )(h_bf, e2.astype(bf16), dinv, b2_p, gamma_p, beta_p)

    return out_p[:N, :out_dim]


def hgnn_reference(x, edge_index, edge_attr, params, keep_mask):
    """Pure-JAX f32 reference with identical semantics (same dropout mask)."""
    N = x.shape[0]
    E = int(edge_attr.shape[0])
    f32 = jnp.float32
    rows, cols = edge_index[0], edge_index[1]
    H = jnp.zeros((N, E), f32).at[rows, cols].add(1.0)
    D = jnp.zeros((N,), f32).at[rows].add(edge_attr[cols])
    B = jnp.zeros((E,), f32).at[cols].add(1.0)
    dinv = jnp.where(D > 0, 1.0 / D, 0.0)[:, None]
    binv = jnp.where(B > 0, 1.0 / B, 0.0)[:, None]

    def hconv(xin, W, b):
        y = xin @ W
        e = binv * (H.T @ y)
        return dinv * (H @ e) + b.reshape(1, -1)

    h1 = jnp.maximum(hconv(x, params["w1"], params["b1"]), 0.0) * keep_mask
    h2 = hconv(h1, params["w2"], params["b2"])
    mu = jnp.mean(h2, axis=1, keepdims=True)
    var = jnp.mean((h2 - mu) ** 2, axis=1, keepdims=True)
    xn = (h2 - mu) * jax.lax.rsqrt(var + _LN_EPS)
    return xn * params["gamma"].reshape(1, -1) + params["beta"].reshape(1, -1)


if __name__ == "__main__":
    key = jax.random.PRNGKey(0)
    keys = jax.random.split(key, 8)

    # Small shapes consistent with the module's forward.
    N, E = 16, 8
    input_dim, hidden_dim1, hidden_dim2, output_dim = 16, 32, 32, 16  # hidden_dim2 unused (as in the module)
    nodes_per_edge = 3

    x = jax.random.normal(keys[0], (N, input_dim), jnp.float32)

    rows, cols = [], []
    for e in range(E):
        perm = jax.random.permutation(jax.random.fold_in(keys[1], e), N)[:nodes_per_edge]
        rows.append(perm.astype(jnp.int32))
        cols.append(jnp.full((nodes_per_edge,), e, jnp.int32))
    edge_index = jnp.stack([jnp.concatenate(rows), jnp.concatenate(cols)], axis=0)
    edge_attr = jax.random.uniform(keys[2], (E,), jnp.float32, 0.5, 1.5)

    def glorot(k, shape):
        fan_in, fan_out = shape
        lim = (6.0 / (fan_in + fan_out)) ** 0.5
        return jax.random.uniform(k, shape, jnp.float32, -lim, lim)

    params = dict(
        w1=glorot(keys[3], (input_dim, hidden_dim1)),        # conv1.lin (bias=False in PyG)
        b1=jnp.zeros((hidden_dim1,), jnp.float32),           # conv1.bias
        w2=glorot(keys[4], (hidden_dim1, output_dim)),       # conv2.lin
        b2=jnp.zeros((output_dim,), jnp.float32),            # conv2.bias
        gamma=jnp.ones((output_dim,), jnp.float32),          # LayerNorm weight
        beta=jnp.zeros((output_dim,), jnp.float32),          # LayerNorm bias
    )

    # Dropout(p=0.3, training=True): inverted mask generated once in the wrapper glue.
    p_drop = 0.3
    keep_mask = (jax.random.uniform(keys[5], (N, hidden_dim1)) >= p_drop
                 ).astype(jnp.float32) / (1.0 - p_drop)

    out = hgnn_forward(x, edge_index, edge_attr, params, keep_mask)
    jax.block_until_ready(out)

    assert out.shape == (N, output_dim) and out.dtype == jnp.float32
    ref = hgnn_reference(x, edge_index, edge_attr, params, keep_mask)
    max_err = float(jnp.max(jnp.abs(out - ref)))
    assert max_err < 0.15, f"max abs error vs reference: {max_err}"
    print("KERNEL_OK")
</pallas_src>

<mosaic_0001>
module attributes {stable_mosaic.version = 11 : i64} {
  func.func @_edge_agg1_kernel(%arg0: i32, %arg1: memref<8x128xbf16, #tpu.memory_space<vmem>>, %arg2: memref<8x128xbf16, #tpu.memory_space<vmem>>, %arg3: memref<128x128xbf16, #tpu.memory_space<vmem>>, %arg4: memref<128x1xf32, #tpu.memory_space<vmem>>, %arg5: memref<128x128xf32, #tpu.memory_space<vmem>>) attributes {dimension_semantics = [#tpu.dimension_semantics<arbitrary>], iteration_bounds = array<i64: 2>, scalar_prefetch = 0 : i64, scratch_operands = 0 : i64, tpu.core_type = #tpu.core_type<tc>, window_params = [{transform_indices = @transform_0, window_bounds = array<i64: 8, 128>}, {transform_indices = @transform_1, window_bounds = array<i64: 8, 128>}, {pipeline_mode = #tpu.pipeline_mode<synchronous>, transform_indices = @transform_2, window_bounds = array<i64: 128, 128>}, {pipeline_mode = #tpu.pipeline_mode<synchronous>, transform_indices = @transform_3, window_bounds = array<i64: 128, 1>}, {pipeline_mode = #tpu.pipeline_mode<synchronous>, transform_indices = @transform_4, window_bounds = array<i64: 128, 128>}]} {
    %c0_i32 = arith.constant 0 : i32
    %0 = arith.cmpi eq, %arg0, %c0_i32 : i32
    %1 = arith.extui %0 : i1 to i32
    %c0_i32_0 = arith.constant 0 : i32
    %2 = arith.cmpi ne, %1, %c0_i32_0 : i32
    scf.if %2 {
      %cst_12 = arith.constant 0.000000e+00 : f32
      %15 = vector.broadcast %cst_12 : f32 to vector<128x128xf32>
      %c0_13 = arith.constant 0 : index
      %c0_14 = arith.constant 0 : index
      %16 = vector.load %arg5[%c0_13, %c0_14] : memref<128x128xf32, #tpu.memory_space<vmem>>, vector<128x128xf32>
      tpu.vector_store %arg5[%c0_13, %c0_14], %15 {strides = array<i32>} : memref<128x128xf32, #tpu.memory_space<vmem>>, vector<128x128xf32>,
    } else {
    }
    %c0 = arith.constant 0 : index
    %c0_1 = arith.constant 0 : index
    %3 = vector.load %arg1[%c0, %c0_1] : memref<8x128xbf16, #tpu.memory_space<vmem>>, vector<8x128xbf16>
    %c0_2 = arith.constant 0 : index
    %c0_3 = arith.constant 0 : index
    %4 = vector.load %arg3[%c0_2, %c0_3] : memref<128x128xbf16, #tpu.memory_space<vmem>>, vector<128x128xbf16>
    %cst = arith.constant dense<0.000000e+00> : vector<8x128xf32>
    %5 = tpu.matmul %3, %4, %cst {dimension_numbers = #tpu.dot_dimension_numbers<[1], [0], [0], [1], [0, 0, 1, 1], [], []>} : vector<8x128xbf16>, vector<128x128xbf16>, vector<8x128xf32> -> vector<8x128xf32>
    %c0_4 = arith.constant 0 : index
    %c0_5 = arith.constant 0 : index
    %6 = vector.load %arg5[%c0_4, %c0_5] : memref<128x128xf32, #tpu.memory_space<vmem>>, vector<128x128xf32>
    %c0_6 = arith.constant 0 : index
    %c0_7 = arith.constant 0 : index
    %7 = vector.load %arg2[%c0_6, %c0_7] : memref<8x128xbf16, #tpu.memory_space<vmem>>, vector<8x128xbf16>
    %8 = arith.truncf %5 : vector<8x128xf32> to vector<8x128xbf16>
    %cst_8 = arith.constant dense<0.000000e+00> : vector<128x128xf32>
    %9 = tpu.matmul %7, %8, %cst_8 {dimension_numbers = #tpu.dot_dimension_numbers<[0], [0], [1], [1], [0, 1, 1, 1], [], []>} : vector<8x128xbf16>, vector<8x128xbf16>, vector<128x128xf32> -> vector<128x128xf32>
    %10 = arith.addf %6, %9 : vector<128x128xf32>
    %c0_9 = arith.constant 0 : index
    %c0_10 = arith.constant 0 : index
    %11 = vector.load %arg5[%c0_9, %c0_10] : memref<128x128xf32, #tpu.memory_space<vmem>>, vector<128x128xf32>
    tpu.vector_store %arg5[%c0_9, %c0_10], %10 {strides = array<i32>} : memref<128x128xf32, #tpu.memory_space<vmem>>, vector<128x128xf32>,
    %c1_i32 = arith.constant 1 : i32
    %12 = arith.cmpi eq, %arg0, %c1_i32 : i32
    %13 = arith.extui %12 : i1 to i32
    %c0_i32_11 = arith.constant 0 : i32
    %14 = arith.cmpi ne, %13, %c0_i32_11 : i32
    scf.if %14 {
      %c0_12 = arith.constant 0 : index
      %c0_13 = arith.constant 0 : index
      %15 = vector.load %arg5[%c0_12, %c0_13] : memref<128x128xf32, #tpu.memory_space<vmem>>, vector<128x128xf32>
      %c0_14 = arith.constant 0 : index
      %c0_15 = arith.constant 0 : index
      %16 = vector.load %arg4[%c0_14, %c0_15] : memref<128x1xf32, #tpu.memory_space<vmem>>, vector<128x1xf32>
      %17 = vector.broadcast %16 : vector<128x1xf32> to vector<128x128xf32>
      %18 = arith.mulf %15, %17 : vector<128x128xf32>
      %c0_16 = arith.constant 0 : index
      %c0_17 = arith.constant 0 : index
      %19 = vector.load %arg5[%c0_16, %c0_17] : memref<128x128xf32, #tpu.memory_space<vmem>>, vector<128x128xf32>
      tpu.vector_store %arg5[%c0_16, %c0_17], %18 {strides = array<i32>} : memref<128x128xf32, #tpu.memory_space<vmem>>, vector<128x128xf32>,
    } else {
    }
    return
  }
  func.func @transform_0(%arg0: i32) -> (i32, i32) {
    %c0_i32 = arith.constant 0 : i32
    %c0_i32_0 = arith.constant 0 : i32
    return %arg0, %c0_i32 : i32, i32
  }
  func.func @transform_1(%arg0: i32) -> (i32, i32) {
    %c0_i32 = arith.constant 0 : i32
    %c0_i32_0 = arith.constant 0 : i32
    return %arg0, %c0_i32 : i32, i32
  }
  func.func @transform_2(%arg0: i32) -> (i32, i32) {
    %c0_i32 = arith.constant 0 : i32
    %c0_i32_0 = arith.constant 0 : i32
    %c0_i32_1 = arith.constant 0 : i32
    return %c0_i32, %c0_i32_0 : i32, i32
  }
  func.func @transform_3(%arg0: i32) -> (i32, i32) {
    %c0_i32 = arith.constant 0 : i32
    %c0_i32_0 = arith.constant 0 : i32
    %c0_i32_1 = arith.constant 0 : i32
    return %c0_i32, %c0_i32_0 : i32, i32
  }
  func.func @transform_4(%arg0: i32) -> (i32, i32) {
    %c0_i32 = arith.constant 0 : i32
    %c0_i32_0 = arith.constant 0 : i32
    %c0_i32_1 = arith.constant 0 : i32
    return %c0_i32, %c0_i32_0 : i32, i32
  }
}

</mosaic_0001>

<bundles_post_ra>
// kernel: tpu_custom_call.1
= control target key start
LH: loop header
LB: loop body
LE: loop exit
PB: predicated region body
PF: predicated region fallthrough
CT: control target
= control target key end

     0   :  { %9 = vsyncpa [#allocation3], 0  ;;  %s806_s15 = smov 0   ;;  %s916_s0 = inlined_call_operand.vmem [shape: bf16[16,128], index: 0, kind: input, shape index: {}]   ;;  %s917_s1 = inlined_call_operand.vmem [shape: bf16[16,128], index: 1, kind: input, shape index: {}]   ;;  %s918_s2 = inlined_call_operand.vmem [shape: bf16[128,128], index: 2, kind: input, shape index: {}]   ;;  %s919_s3 = inlined_call_operand.vmem [shape: f32[128,1], index: 3, kind: input, shape index: {}]   ;;  %s920_s4 = inlined_call_operand.hbm [shape: f32[128,128], index: 4, kind: output, shape index: {}]  }
   0x1 LB: > { %s812_s16 = sadd.s32 4294967295, %s774_s15   ;;  %p654_p0 = scmp.ge.s32.totalorder %s774_s15, 1  ;;  %s774_s15 = sphi %s806_s15, %s15_s15  }
   0x2   : > { %p166_p1 = scmp.lt.s32.totalorder %s774_s15, 3 }
   0x4   : > { %p167_p2 = pnand %p654_p0, %p166_p1 }
   0x5   : > { %p190_p3 = scmp.lt.s32.totalorder (!%p167_p2), %s812_s16, 1  ;;  %p657_p4 = scmp.ne.s32.totalorder (!%p167_p2), %s812_s16, 0 }
   0x6   : > { %170 = sbr.rel (%p167_p2) target bundleno = 630 (0x276), region = 36 }
   0xb   : > { %s191_s17 = scalar_select %p190_p3, %s812_s16, 1 }
   0xc   : > { %202 = sbr.rel (%p657_p4) target bundleno = 34 (0x22), region = 40 }
   0xd   : > { %s655_s18 = sshll.u32 %s191_s17, 2 }
   0xe   : > { %s821_s21 = scalar_lea.vmem %s916_s0, %s655_s18  ;;  %s197_s24 = scalar_lea.vmem %s917_s1, %s655_s18 }
  0x11   : > { %v776_v0 = vmov 0.0  }
  0x12   : > { %203 = vst [vmem:[#allocation2] sm:$0xff] %v776_v0 }
  0x13   : > { %204 = vst [vmem:[#allocation2 + $0x8] sm:$0xff] %v776_v0 }
  0x14   : > { %205 = vst [vmem:[#allocation2 + $0x10] sm:$0xff] %v776_v0 }
  0x15   : > { %206 = vst [vmem:[#allocation2 + $0x18] sm:$0xff] %v776_v0 }
  0x16   : > { %207 = vst [vmem:[#allocation2 + $0x20] sm:$0xff] %v776_v0 }
  0x17   : > { %208 = vst [vmem:[#allocation2 + $0x28] sm:$0xff] %v776_v0 }
  0x18   : > { %209 = vst [vmem:[#allocation2 + $0x30] sm:$0xff] %v776_v0 }
  0x19   : > { %210 = vst [vmem:[#allocation2 + $0x38] sm:$0xff] %v776_v0 }
  0x1a   : > { %211 = vst [vmem:[#allocation2 + $0x40] sm:$0xff] %v776_v0 }
  0x1b   : > { %212 = vst [vmem:[#allocation2 + $0x48] sm:$0xff] %v776_v0 }
  0x1c   : > { %213 = vst [vmem:[#allocation2 + $0x50] sm:$0xff] %v776_v0 }
  0x1d   : > { %214 = vst [vmem:[#allocation2 + $0x58] sm:$0xff] %v776_v0 }
  0x1e   : > { %215 = vst [vmem:[#allocation2 + $0x60] sm:$0xff] %v776_v0 }
  0x1f   : > { %216 = vst [vmem:[#allocation2 + $0x68] sm:$0xff] %v776_v0 }
  0x20   : > { %217 = vst [vmem:[#allocation2 + $0x70] sm:$0xff] %v776_v0 }
  0x21   : > { %218 = vst [vmem:[#allocation2 + $0x78] sm:$0xff] %v776_v0 }
  0x22 PF: > { %v313_v1 = vld [vmem:[%s197_s24] sm:$0xf]  ;;  %v710_v2 = vld [vmem:[%s918_s2 + $0x38] sm:$0xff]  ;;  %v709_v3 = vld [vmem:[%s918_s2 + $0x30] sm:$0xff]  ;;  %vm356_vm0 = vcmask 1043456   ;;  %vm331_vm1 = vcmask 64512  }
  0x23   : > { %315 = vxpose.xlu0.c.b16.start.end [1/1] (short) %v313_v1, 128  ;;  %284 = vmatpush.bf16.msra.mxu0 %v710_v2  ;;  %v708_v4 = vld [vmem:[%s918_s2 + $0x28] sm:$0xff]  ;;  %v707_v5 = vld [vmem:[%s918_s2 + $0x20] sm:$0xff]  ;;  %v706_v6 = vld [vmem:[%s918_s2 + $0x18] sm:$0xff]  ;;  %p698_p5 = scmp.ne.s32.totalorder %s812_s16, 1 }
  0x24   : > { %v705_v7 = vld [vmem:[%s918_s2 + $0x10] sm:$0xff]  ;;  %v704_v8 = vld [vmem:[%s918_s2 + $0x8] sm:$0xff]  ;;  %v703_v9 = vld [vmem:[%s918_s2] sm:$0xff] }
  0x25   : > { %v219_v10 = vld [vmem:[%s821_s21] sm:$0xf]  ;;  %v298_v26 = vld [vmem:[#allocation2 + $0x8] sm:$0xff]  ;;  %v299_v29 = vld [vmem:[#allocation2 + $0x10] sm:$0xff] }
  0x26   : > { %v297_v23 = vld [vmem:[#allocation2] sm:$0xff]  ;;  %v300_v32 = vld [vmem:[#allocation2 + $0x18] sm:$0xff]  ;;  %v302_v38 = vld [vmem:[#allocation2 + $0x28] sm:$0xff] }
  0x27   : > { %285 = vmatpush.bf16.msra.mxu0 %v709_v3  ;;  %v301_v35 = vld [vmem:[#allocation2 + $0x20] sm:$0xff]  ;;  %v303_v41 = vld [vmem:[#allocation2 + $0x30] sm:$0xff]  ;;  %v304_v44 = vld [vmem:[#allocation2 + $0x38] sm:$0xff] }
  0x28   : > { %v305_v47 = vld [vmem:[#allocation2 + $0x40] sm:$0xff]  ;;  %v306_v50 = vld [vmem:[#allocation2 + $0x48] sm:$0xff]  ;;  %v307_v53 = vld [vmem:[#allocation2 + $0x50] sm:$0xff] }
  0x29   : > { %v308_v56 = vld [vmem:[#allocation2 + $0x58] sm:$0xff]  ;;  %v309_v59 = vld [vmem:[#allocation2 + $0x60] sm:$0xff]  ;;  %v310_v62 = vld [vmem:[#allocation2 + $0x68] sm:$0xff] }
  0x2a   : > { %v311_v1 = vld [vmem:[#allocation2 + $0x70] sm:$0xff] }
  0x2b   : > { %286 = vmatpush.bf16.msra.mxu0 %v708_v4  ;;  %v312_v4 = vld [vmem:[#allocation2 + $0x78] sm:$0xff] }
  0x2f   : > { %287 = vmatpush.bf16.msra.mxu0 %v707_v5 }
  0x33   : > { %288 = vmatpush.bf16.msra.mxu0 %v706_v6 }
  0x37   : > { %289 = vmatpush.bf16.msra.mxu0 %v705_v7 }
  0x3b   : > { %290 = vmatpush.bf16.msra.mxu0 %v704_v8 }
  0x3f   : > { %291 = vmatpush.bf16.msra.mxu0 %v703_v9 }
  0x42   : > { %292 = vmatmul.bf16.vlgmr.msra.gmra.mxu0 %v219_v10 }
  0xbf   : > { %v293_v11 = vpop.f32.mrf.mxu0 }
  0xc0   : > { %v314_v12 = vpack.c.bf16 %v293_v11, %v293_v11 }
  0xc2   : > { %v358_v13 = vsel %vm356_vm0, %v314_v12, 0 }
  0xc3   : > { %367 = vmatpush.bf16.msra.mxu1 %v358_v13  ;;  %711 = vmatpush.bf16.msra.mxu2 %v358_v13 }
  0xc4   : > { %712 = vmatpush.bf16.msra.mxu3 %v358_v13 }
  0xc7   : > { %v295_v14 = vpop.f32.mrf.mxu0 }
  0xcf   : > { %v323_v15 = vpop.trf.xlu0 }
  0xd0   : > { %690 = vmatmul.msk.bf16.vlgmr.msra.gmra.mxu1 %vm331_vm1, %v323_v15 }
  0xdf   : > { %v324_v16 = vpop.trf.xlu0 }
  0xe0   : > { %691 = vmatmul.msk.bf16.gmra.mxu1 %vm331_vm1, %v324_v16 }
  0xef   : > { %v325_v17 = vpop.trf.xlu0 }
  0xf0   : > { %692 = vmatmul.msk.bf16.gmra.mxu1 %vm331_vm1, %v325_v17 }
  0xff   : > { %v326_v18 = vpop.trf.xlu0 }
 0x100   : > { %693 = vmatmul.msk.bf16.vlgmr.msra.gmra.mxu2 %vm331_vm1, %v326_v18 }
 0x10f   : > { %v327_v19 = vpop.trf.xlu0 }
 0x110   : > { %694 = vmatmul.msk.bf16.gmra.mxu2 %vm331_vm1, %v327_v19 }
 0x11f   : > { %v328_v20 = vpop.trf.xlu0 }
 0x120   : > { %695 = vmatmul.msk.bf16.gmra.mxu2 %vm331_vm1, %v328_v20 }
 0x12f   : > { %v329_v21 = vpop.trf.xlu0 }
 0x130   : > { %696 = vmatmul.msk.bf16.vlgmr.msra.gmra.mxu3 %vm331_vm1, %v329_v21 }
 0x13f   : > { %v330_v22 = vpop.trf.xlu0 }
 0x140   : > { %697 = vmatmul.msk.bf16.gmra.mxu3 %vm331_vm1, %v330_v22 }
 0x14d   : > { %v369_v24 = vpop.f32.mrf.mxu1 }
 0x14e   : > { %v409_v25 = vadd.f32 %v369_v24, %v297_v23 }
 0x150   : > { %425 = vst [vmem:[#allocation2] sm:$0xff] %v409_v25 }
 0x155   : > { %v371_v27 = vpop.f32.mrf.mxu1 }
 0x156   : > { %v410_v28 = vadd.f32 %v371_v27, %v298_v26 }
 0x158   : > { %426 = vst [vmem:[#allocation2 + $0x8] sm:$0xff] %v410_v28 }
 0x15d   : > { %v374_v30 = vpop.f32.mrf.mxu1 }
 0x15e   : > { %v411_v31 = vadd.f32 %v374_v30, %v299_v29 }
 0x160   : > { %427 = vst [vmem:[#allocation2 + $0x10] sm:$0xff] %v411_v31 }
 0x165   : > { %v376_v33 = vpop.f32.mrf.mxu1 }
 0x166   : > { %v412_v34 = vadd.f32 %v376_v33, %v300_v32 }
 0x168   : > { %428 = vst [vmem:[#allocation2 + $0x18] sm:$0xff] %v412_v34 }
 0x16d   : > { %v379_v36 = vpop.f32.mrf.mxu1 }
 0x16e   : > { %v413_v37 = vadd.f32 %v379_v36, %v301_v35 }
 0x170   : > { %429 = vst [vmem:[#allocation2 + $0x20] sm:$0xff] %v413_v37 }
 0x175   : > { %v381_v39 = vpop.f32.mrf.mxu1 }
 0x176   : > { %v414_v40 = vadd.f32 %v381_v39, %v302_v38 }
 0x178   : > { %430 = vst [vmem:[#allocation2 + $0x28] sm:$0xff] %v414_v40 }
 0x183   : > { %v384_v42 = vpop.f32.mrf.mxu2 }
 0x184   : > { %v415_v43 = vadd.f32 %v384_v42, %v303_v41 }
 0x186   : > { %431 = vst [vmem:[#allocation2 + $0x30] sm:$0xff] %v415_v43 }
 0x18b   : > { %v386_v45 = vpop.f32.mrf.mxu2 }
 0x18c   : > { %v416_v46 = vadd.f32 %v386_v45, %v304_v44 }
 0x18e   : > { %432 = vst [vmem:[#allocation2 + $0x38] sm:$0xff] %v416_v46 }
 0x193   : > { %v389_v48 = vpop.f32.mrf.mxu2 }
 0x194   : > { %v417_v49 = vadd.f32 %v389_v48, %v305_v47 }
 0x196   : > { %433 = vst [vmem:[#allocation2 + $0x40] sm:$0xff] %v417_v49 }
 0x19b   : > { %v391_v51 = vpop.f32.mrf.mxu2 }
 0x19c   : > { %v418_v52 = vadd.f32 %v391_v51, %v306_v50 }
 0x19e   : > { %434 = vst [vmem:[#allocation2 + $0x48] sm:$0xff] %v418_v52 }
 0x1a3   : > { %v394_v54 = vpop.f32.mrf.mxu2 }
 0x1a4   : > { %v419_v55 = vadd.f32 %v394_v54, %v307_v53 }
 0x1a6   : > { %435 = vst [vmem:[#allocation2 + $0x50] sm:$0xff] %v419_v55 }
 0x1ab   : > { %v396_v57 = vpop.f32.mrf.mxu2 }
 0x1ac   : > { %v420_v58 = vadd.f32 %v396_v57, %v308_v56 }
 0x1ae   : > { %436 = vst [vmem:[#allocation2 + $0x58] sm:$0xff] %v420_v58 }
 0x1b3   : > { %v399_v60 = vpop.f32.mrf.mxu3 }
 0x1b4   : > { %v421_v61 = vadd.f32 %v399_v60, %v309_v59 }
 0x1b6   : > { %437 = vst [vmem:[#allocation2 + $0x60] sm:$0xff] %v421_v61 }
 0x1bb   : > { %v401_v63 = vpop.f32.mrf.mxu3 }
 0x1bc   : > { %v422_v0 = vadd.f32 %v401_v63, %v310_v62 }
 0x1be   : > { %438 = vst [vmem:[#allocation2 + $0x68] sm:$0xff] %v422_v0 }
 0x1c3   : > { %v404_v2 = vpop.f32.mrf.mxu3 }
 0x1c4   : > { %v423_v3 = vadd.f32 %v404_v2, %v311_v1 }
 0x1c6   : > { %439 = vst [vmem:[#allocation2 + $0x70] sm:$0xff] %v423_v3 }
 0x1ca   : > { %444 = sbr.rel (%p698_p5) target bundleno = 624 (0x270), region = 44 }
 0x1cb   : > { %v406_v5 = vpop.f32.mrf.mxu3 }
 0x1cc   : > { %v424_v6 = vadd.f32 %v406_v5, %v312_v4 }
 0x1ce   : > { %440 = vst [vmem:[#allocation2 + $0x78] sm:$0xff] %v424_v6 }
 0x1cf   : > { %v465_v7 = vld [vmem:[%s919_s3 + $0x20] sm:$0xff]  ;;  %v463_v8 = vld [vmem:[%s919_s3 + $0x10] sm:$0xff]  ;;  %v777_v10 = vmov 0   ;;  %v466_v11 = vld [vmem:[%s919_s3 + $0x28] sm:$0xff] }
 0x1d0   : > { %v461_v9 = vld [vmem:[%s919_s3] sm:$0xff]  ;;  %735 = vset.pattern.permute.xlu2 %v777_v10  ;;  %734 = vset.pattern.permute.xlu1 %v777_v10  ;;  %v464_v12 = vld [vmem:[%s919_s3 + $0x18] sm:$0xff]  ;;  %v462_v13 = vld [vmem:[%s919_s3 + $0x8] sm:$0xff] }
 0x1d1   : > { %733 = vset.pattern.permute.xlu0 %v777_v10  ;;  %499 = vperm.xlu2 %735, %v465_v7   ;;  %v469_v14 = vld [vmem:[%s919_s3 + $0x40] sm:$0xff]  ;;  %v468_v15 = vld [vmem:[%s919_s3 + $0x38] sm:$0xff]  ;;  %v467_v16 = vld [vmem:[%s919_s3 + $0x30] sm:$0xff] }
 0x1d2   : > { %489 = vperm.xlu1 %734, %v463_v8   ;;  %479 = vperm.xlu0 %733, %v461_v9   ;;  %v472_v17 = vld [vmem:[%s919_s3 + $0x58] sm:$0xff]  ;;  %v471_v18 = vld [vmem:[%s919_s3 + $0x50] sm:$0xff]  ;;  %v470_v19 = vld [vmem:[%s919_s3 + $0x48] sm:$0xff] }
 0x1d3   : > { %v475_v20 = vld [vmem:[%s919_s3 + $0x70] sm:$0xff]  ;;  %v474_v21 = vld [vmem:[%s919_s3 + $0x68] sm:$0xff]  ;;  %v473_v22 = vld [vmem:[%s919_s3 + $0x60] sm:$0xff] }
 0x1d4   : > { %v476_v23 = vld [vmem:[%s919_s3 + $0x78] sm:$0xff]  ;;  %v449_v24 = vld [vmem:[#allocation2 + $0x20] sm:$0xff]  ;;  %v450_v27 = vld [vmem:[#allocation2 + $0x28] sm:$0xff] }
 0x1d5   : > { %v453_v30 = vld [vmem:[#allocation2 + $0x40] sm:$0xff]  ;;  %v456_v33 = vld [vmem:[#allocation2 + $0x58] sm:$0xff]  ;;  %v447_v34 = vld [vmem:[#allocation2 + $0x10] sm:$0xff] }
 0x1d6   : > { %v445_v35 = vld [vmem:[#allocation2] sm:$0xff]  ;;  %v459_v42 = vld [vmem:[#allocation2 + $0x70] sm:$0xff]  ;;  %v448_v43 = vld [vmem:[#allocation2 + $0x18] sm:$0xff] }
 0x1d7   : > { %v446_v44 = vld [vmem:[#allocation2 + $0x8] sm:$0xff]  ;;  %v452_v51 = vld [vmem:[#allocation2 + $0x38] sm:$0xff]  ;;  %v451_v52 = vld [vmem:[#allocation2 + $0x30] sm:$0xff] }
 0x1d8   : > { %v455_v57 = vld [vmem:[#allocation2 + $0x50] sm:$0xff]  ;;  %v454_v58 = vld [vmem:[#allocation2 + $0x48] sm:$0xff]  ;;  %v457_v0 = vld [vmem:[#allocation2 + $0x60] sm:$0xff] }
 0x1d9   : > { %504 = vperm.xlu2 %735, %v466_v11   ;;  %v458_v63 = vld [vmem:[#allocation2 + $0x68] sm:$0xff]  ;;  %v460_v5 = vld [vmem:[#allocation2 + $0x78] sm:$0xff] }
 0x1da   : > { %494 = vperm.xlu1 %734, %v464_v12   ;;  %484 = vperm.xlu0 %733, %v462_v13  }
 0x1e1   : > { %519 = vperm.xlu2 %735, %v469_v14  }
 0x1e2   : > { %514 = vperm.xlu1 %734, %v468_v15   ;;  %509 = vperm.xlu0 %733, %v467_v16  }
 0x1e9   : > { %534 = vperm.xlu2 %735, %v472_v17  }
 0x1ea   : > { %529 = vperm.xlu1 %734, %v471_v18   ;;  %524 = vperm.xlu0 %733, %v470_v19  }
 0x1f1   : > { %549 = vperm.xlu2 %735, %v475_v20  }
 0x1f2   : > { %544 = vperm.xlu1 %734, %v474_v21   ;;  %539 = vperm.xlu0 %733, %v473_v22  }
 0x1fa   : > { %554 = vperm.xlu0 %733, %v476_v23  }
 0x22b   : > { %v500_v25 = vpop.permute.xlu2 %499 }
 0x22c   : > { %v561_v26 = vmul.f32 %v500_v25, %v449_v24 }
 0x22e   : > { %577 = vst [vmem:[#allocation2 + $0x20] sm:$0xff] %v561_v26 }
 0x233   : > { %v505_v28 = vpop.permute.xlu2 %504 }
 0x234   : > { %v562_v29 = vmul.f32 %v505_v28, %v450_v27 }
 0x236   : > { %578 = vst [vmem:[#allocation2 + $0x28] sm:$0xff] %v562_v29 }
 0x23b   : > { %v520_v31 = vpop.permute.xlu2 %519 }
 0x23c   : > { %v565_v32 = vmul.f32 %v520_v31, %v453_v30 }
 0x23e   : > { %581 = vst [vmem:[#allocation2 + $0x40] sm:$0xff] %v565_v32 }
 0x243   : > { %v535_v36 = vpop.permute.xlu2 %534 }
 0x244   : > { %v568_v37 = vmul.f32 %v535_v36, %v456_v33  ;;  %v490_v38 = vpop.permute.xlu1 %489  ;;  %v480_v39 = vpop.permute.xlu0 %479 }
 0x245   : > { %v559_v40 = vmul.f32 %v490_v38, %v447_v34  ;;  %v557_v41 = vmul.f32 %v480_v39, %v445_v35 }
 0x246   : > { %584 = vst [vmem:[#allocation2 + $0x58] sm:$0xff] %v568_v37 }
 0x247   : > { %575 = vst [vmem:[#allocation2 + $0x10] sm:$0xff] %v559_v40 }
 0x248   : > { %573 = vst [vmem:[#allocation2] sm:$0xff] %v557_v41 }
 0x24b   : > { %v550_v45 = vpop.permute.xlu2 %549 }
 0x24c   : > { %v571_v46 = vmul.f32 %v550_v45, %v459_v42  ;;  %v495_v47 = vpop.permute.xlu1 %494  ;;  %v485_v48 = vpop.permute.xlu0 %484 }
 0x24d   : > { %v560_v49 = vmul.f32 %v495_v47, %v448_v43  ;;  %v558_v50 = vmul.f32 %v485_v48, %v446_v44 }
 0x24e   : > { %587 = vst [vmem:[#allocation2 + $0x70] sm:$0xff] %v571_v46 }
 0x24f   : > { %576 = vst [vmem:[#allocation2 + $0x18] sm:$0xff] %v560_v49 }
 0x250   : > { %574 = vst [vmem:[#allocation2 + $0x8] sm:$0xff] %v558_v50 }
 0x254   : > { %v515_v53 = vpop.permute.xlu1 %514  ;;  %v510_v54 = vpop.permute.xlu0 %509 }
 0x255   : > { %v564_v55 = vmul.f32 %v515_v53, %v452_v51  ;;  %v563_v56 = vmul.f32 %v510_v54, %v451_v52 }
 0x257   : > { %580 = vst [vmem:[#allocation2 + $0x38] sm:$0xff] %v564_v55 }
 0x258   : > { %579 = vst [vmem:[#allocation2 + $0x30] sm:$0xff] %v563_v56 }
 0x25c   : > { %v530_v59 = vpop.permute.xlu1 %529  ;;  %v525_v60 = vpop.permute.xlu0 %524 }
 0x25d   : > { %v567_v61 = vmul.f32 %v530_v59, %v455_v57  ;;  %v566_v62 = vmul.f32 %v525_v60, %v454_v58 }
 0x25f   : > { %583 = vst [vmem:[#allocation2 + $0x50] sm:$0xff] %v567_v61 }
 0x260   : > { %582 = vst [vmem:[#allocation2 + $0x48] sm:$0xff] %v566_v62 }
 0x264   : > { %v545_v1 = vpop.permute.xlu1 %544  ;;  %v540_v2 = vpop.permute.xlu0 %539 }
 0x265   : > { %v570_v3 = vmul.f32 %v545_v1, %v458_v63  ;;  %v569_v4 = vmul.f32 %v540_v2, %v457_v0 }
 0x267   : > { %586 = vst [vmem:[#allocation2 + $0x68] sm:$0xff] %v570_v3 }
 0x268   : > { %585 = vst [vmem:[#allocation2 + $0x60] sm:$0xff] %v569_v4 }
 0x26c   : > { %v555_v6 = vpop.permute.xlu0 %554 }
 0x26d   : > { %v572_v7 = vmul.f32 %v555_v6, %v460_v5 }
 0x26f   : > { %588 = vst [vmem:[#allocation2 + $0x78] sm:$0xff] %v572_v7 }
 0x270 PF: > { %p717_p6 = scmp.eq.s32.totalorder %s812_s16, 1  ;;  %s778_s25 = smov [#allocation2]  }
 0x271   : > { %s594_s26 = sshll.u32 %s778_s25, 4  ;;  %s596_s29 = sshll.u32 %s920_s4, 4  ;;  %s595_s26 = int_to_ptr.vmem [resolvable:$true] %s594_s26  ;;  %s597_s29 = int_to_ptr.hbm [resolvable:$true] %s596_s29 }
 0x272   : > { %s779_s30 = smov 128   ;;  %s780_s5 = smov 8  }
 0x273   : > { %714 = dma.vmem_to_hbm [thread:$0]  (%p717_p6), %s595_s26, 2048, %s597_s29, [#allocation3], %s779_s30, %s779_s30, %s780_s5  }
 0x274   : > { %769 = dma.done.wait (%p717_p6), [#allocation3], 2048  }
 0x275   : > { %771 = vsyncadd (%p717_p6), [#allocation3], 4294965248 }
 0x276 PF: > { %s15_s15 = sadd.s32 1, %s774_s15  }
 0x277   : > { %p12_p7 = scmp.ge.s32.totalorder %s15_s15, 4  }
 0x279   :  { %14 = sbr.rel (!%p12_p7) target bundleno = 1 (0x1), region = 74 }
 0x27e   :  { %613 = vsyncpa [#allocation3], 1 }
 0x27f   :  { %615 = vsyncpa [#allocation3 + $0x1], 1 }

</bundles_post_ra>
